<compile_context>
chip_gen: v5e
topology: v5e:2x2
jax: 0.10.0
libtpu: 0.0.40
codegen_flags: <defaults>
</compile_context>

<pallas_src>
import functools

import jax
import jax.numpy as jnp
from jax.experimental import pallas as pl
from jax.experimental.pallas import tpu as pltpu


def _round_up(v, m):
    return (v + m - 1) // m * m


def _sublane_granule(dtype):
    # Second-minor tiling granule: 8 for 4-byte, 16 for 2-byte, 32 for 1-byte.
    return max(8, 32 // jnp.dtype(dtype).itemsize)


def _pick_images_per_block(n, c_in, c_out, hw, p, dtype, budget_bytes,
                           max_images_per_block):
    """Images per grid step.

    Largest divisor of n whose double-buffered input+output block pair fits
    the VMEM budget, subject to sublane alignment of the second-minor block
    dims (unless the block covers the whole array, which is always legal) and
    a cap that bounds the unrolled store loop.
    """
    item = jnp.dtype(dtype).itemsize
    g = _sublane_granule(dtype)

    def block_bytes(k):
        in_b = _round_up(k * c_in, g) * _round_up(hw, 128) * item
        out_b = _round_up(k * c_out, g) * _round_up(p, 128) * item
        return 2 * (in_b + out_b)          # x2: double-buffered pipeline

    def aligned(k):
        return k == n or ((k * c_in) % g == 0 and (k * c_out) % g == 0)

    divisors = [k for k in range(1, n + 1) if n % k == 0]
    candidates = [k for k in divisors if aligned(k)] or [n]
    capped = [k for k in candidates if k <= max_images_per_block] or [min(candidates)]
    fits = [k for k in capped if block_bytes(k) <= budget_bytes]
    return max(fits) if fits else min(capped)


def _shortcut_kernel(x_ref, sel_ref, o_ref, *, images, c_in, c_out, pad):
    # x_ref:   (images*c_in,  H*W)           lane-dense input rows
    # sel_ref: (H*W, (H/2)*(W/2))            0/1 gather matrix (even rows/cols)
    # o_ref:   (images*c_out, (H/2)*(W/2))   lane-dense output rows
    y = jnp.dot(x_ref[...], sel_ref[...],
                preferred_element_type=jnp.float32,
                precision=jax.lax.Precision.HIGHEST)
    y = y.astype(o_ref.dtype)

    p = o_ref.shape[-1]
    zeros = jnp.zeros((pad, p), dtype=o_ref.dtype) if pad > 0 else None
    for i in range(images):                 # static Python loop (unrolled)
        src = i * c_in
        dst = i * c_out
        # Data channels: stored exactly once.
        o_ref[dst + pad:dst + pad + c_in, :] = y[src:src + c_in, :]
        if pad > 0:
            # Zero-pad channels: also stored exactly once.
            o_ref[dst:dst + pad, :] = zeros
            o_ref[dst + pad + c_in:dst + c_out, :] = zeros


def lambda_layer(x, planes, *, vmem_budget_bytes=12 * 1024 * 1024,
                 max_images_per_block=64):
    """Pallas implementation of the ResNet option-A shortcut LambdaLayer.

    x: (N, C, H, W) with H, W even.  Returns (N, C + 2*(planes//4), H//2, W//2).
    """
    n, c, h, w = x.shape
    assert h % 2 == 0 and w % 2 == 0, "even spatial dims expected (CIFAR ResNet)"
    pad = planes // 4
    hh, wh = h // 2, w // 2
    c_out = c + 2 * pad
    hw = h * w
    p = hh * wh

    # Free row-major flattening to lane-dense 2-D views.
    x2 = x.reshape(n * c, hw)

    # Constant 0/1 gather matrix: output pixel p0 = i*wh + j reads the source
    # pixel (2i, 2j), i.e. flattened index 2i*W + 2j.  Built from iota/eq so
    # XLA constant-folds it under jit.
    out_idx = jnp.arange(p, dtype=jnp.int32)
    src_idx = 2 * (out_idx // wh) * w + 2 * (out_idx % wh)
    sel = (jnp.arange(hw, dtype=jnp.int32)[:, None] == src_idx[None, :]
           ).astype(jnp.float32)

    images = _pick_images_per_block(n, c, c_out, hw, p, x.dtype,
                                    vmem_budget_bytes, max_images_per_block)
    grid = (n // images,)

    kernel = functools.partial(_shortcut_kernel, images=images, c_in=c,
                               c_out=c_out, pad=pad)

    itemsize = jnp.dtype(x.dtype).itemsize
    cost = pl.CostEstimate(
        flops=2 * (n * c) * hw * p,
        transcendentals=0,
        bytes_accessed=(n * c * hw + n * c_out * p) * itemsize + hw * p * 4,
    )

    out2 = pl.pallas_call(
        kernel,
        out_shape=jax.ShapeDtypeStruct((n * c_out, p), x.dtype),
        grid=grid,
        in_specs=[
            pl.BlockSpec((images * c, hw), lambda i: (i, 0)),
            pl.BlockSpec((hw, p), lambda i: (0, 0)),   # constant block: fetched once
        ],
        out_specs=pl.BlockSpec((images * c_out, p), lambda i: (i, 0)),
        compiler_params=pltpu.CompilerParams(
            dimension_semantics=("parallel",),
        ),
        cost_estimate=cost,
    )(x2, sel)

    return out2.reshape(n, c_out, hh, wh)


def _reference(x, planes):
    pad = planes // 4
    y = x[:, :, ::2, ::2]
    return jnp.pad(y, ((0, 0), (pad, pad), (0, 0), (0, 0)))


if __name__ == "__main__":
    key = jax.random.PRNGKey(0)
    # Small shapes consistent with the ResNet-s shortcut: C=4 -> planes=8.
    x = jax.random.normal(key, (2, 4, 16, 16), dtype=jnp.float32)
    planes = 8

    out = jax.block_until_ready(lambda_layer(x, planes))

    expected = _reference(x, planes)
    assert out.shape == (2, 8, 8, 8), out.shape
    # HIGHEST-precision 0/1 gather matmul is (near-)exact; a loose-but-real
    # tolerance still catches any bf16-truncated matmul path.
    assert bool(jnp.allclose(out, expected, rtol=1e-4, atol=1e-4)), "mismatch vs reference"
    print("KERNEL_OK")
</pallas_src>

<mosaic_0001>
module attributes {stable_mosaic.version = 11 : i64} {
  func.func @_shortcut_kernel(%arg0: i32, %arg1: memref<8x256xf32, #tpu.memory_space<vmem>>, %arg2: memref<256x64xf32, #tpu.memory_space<vmem>>, %arg3: memref<16x64xf32, #tpu.memory_space<vmem>>) attributes {dimension_semantics = [#tpu.dimension_semantics<parallel>], iteration_bounds = array<i64: 1>, scalar_prefetch = 0 : i64, scratch_operands = 0 : i64, tpu.core_type = #tpu.core_type<tc>, window_params = [{transform_indices = @transform_0, window_bounds = array<i64: 8, 256>}, {pipeline_mode = #tpu.pipeline_mode<synchronous>, transform_indices = @transform_1, window_bounds = array<i64: 256, 64>}, {transform_indices = @transform_2, window_bounds = array<i64: 16, 64>}]} {
    %c0 = arith.constant 0 : index
    %c0_0 = arith.constant 0 : index
    %0 = vector.load %arg1[%c0, %c0_0] : memref<8x256xf32, #tpu.memory_space<vmem>>, vector<8x256xf32>
    %c0_1 = arith.constant 0 : index
    %c0_2 = arith.constant 0 : index
    %1 = vector.load %arg2[%c0_1, %c0_2] : memref<256x64xf32, #tpu.memory_space<vmem>>, vector<256x64xf32>
    %cst = arith.constant dense<0.000000e+00> : vector<8x64xf32>
    %2 = tpu.matmul %0, %1, %cst {dimension_numbers = #tpu.dot_dimension_numbers<[1], [0], [0], [1], [0, 0, 1, 1], [], []>, precision = #tpu.contract_precision<fp32>} : vector<8x256xf32>, vector<256x64xf32>, vector<8x64xf32> -> vector<8x64xf32>
    %cst_3 = arith.constant 0.000000e+00 : f32
    %3 = vector.broadcast %cst_3 : f32 to vector<2x64xf32>
    %4 = vector.extract_strided_slice %2 {offsets = [0, 0], sizes = [4, 64], strides = [1, 1]} : vector<8x64xf32> to vector<4x64xf32>
    %c2 = arith.constant 2 : index
    %c0_4 = arith.constant 0 : index
    %5 = vector.load %arg3[%c2, %c0_4] : memref<16x64xf32, #tpu.memory_space<vmem>>, vector<4x64xf32>
    tpu.vector_store %arg3[%c2, %c0_4], %4 {strides = array<i32>} : memref<16x64xf32, #tpu.memory_space<vmem>>, vector<4x64xf32>,
    %c0_5 = arith.constant 0 : index
    %c0_6 = arith.constant 0 : index
    %6 = vector.load %arg3[%c0_5, %c0_6] : memref<16x64xf32, #tpu.memory_space<vmem>>, vector<2x64xf32>
    tpu.vector_store %arg3[%c0_5, %c0_6], %3 {strides = array<i32>} : memref<16x64xf32, #tpu.memory_space<vmem>>, vector<2x64xf32>,
    %c6 = arith.constant 6 : index
    %c0_7 = arith.constant 0 : index
    %7 = vector.load %arg3[%c6, %c0_7] : memref<16x64xf32, #tpu.memory_space<vmem>>, vector<2x64xf32>
    tpu.vector_store %arg3[%c6, %c0_7], %3 {strides = array<i32>} : memref<16x64xf32, #tpu.memory_space<vmem>>, vector<2x64xf32>,
    %8 = vector.extract_strided_slice %2 {offsets = [4, 0], sizes = [4, 64], strides = [1, 1]} : vector<8x64xf32> to vector<4x64xf32>
    %c10 = arith.constant 10 : index
    %c0_8 = arith.constant 0 : index
    %9 = vector.load %arg3[%c10, %c0_8] : memref<16x64xf32, #tpu.memory_space<vmem>>, vector<4x64xf32>
    tpu.vector_store %arg3[%c10, %c0_8], %8 {strides = array<i32>} : memref<16x64xf32, #tpu.memory_space<vmem>>, vector<4x64xf32>,
    %c8 = arith.constant 8 : index
    %c0_9 = arith.constant 0 : index
    %10 = vector.load %arg3[%c8, %c0_9] : memref<16x64xf32, #tpu.memory_space<vmem>>, vector<2x64xf32>
    tpu.vector_store %arg3[%c8, %c0_9], %3 {strides = array<i32>} : memref<16x64xf32, #tpu.memory_space<vmem>>, vector<2x64xf32>,
    %c14 = arith.constant 14 : index
    %c0_10 = arith.constant 0 : index
    %11 = vector.load %arg3[%c14, %c0_10] : memref<16x64xf32, #tpu.memory_space<vmem>>, vector<2x64xf32>
    tpu.vector_store %arg3[%c14, %c0_10], %3 {strides = array<i32>} : memref<16x64xf32, #tpu.memory_space<vmem>>, vector<2x64xf32>,
    return
  }
  func.func @transform_0(%arg0: i32) -> (i32, i32) {
    %c0_i32 = arith.constant 0 : i32
    %c0_i32_0 = arith.constant 0 : i32
    return %arg0, %c0_i32 : i32, i32
  }
  func.func @transform_1(%arg0: i32) -> (i32, i32) {
    %c0_i32 = arith.constant 0 : i32
    %c0_i32_0 = arith.constant 0 : i32
    %c0_i32_1 = arith.constant 0 : i32
    return %c0_i32, %c0_i32_0 : i32, i32
  }
  func.func @transform_2(%arg0: i32) -> (i32, i32) {
    %c0_i32 = arith.constant 0 : i32
    %c0_i32_0 = arith.constant 0 : i32
    return %arg0, %c0_i32 : i32, i32
  }
}

</mosaic_0001>

<bundles_post_ra>
// kernel: tpu_custom_call.1
= control target key start
LH: loop header
LB: loop body
LE: loop exit
PB: predicated region body
PF: predicated region fallthrough
CT: control target
= control target key end

     0   :  { %s1415_s0 = inlined_call_operand.vmem [shape: f32[8,256], index: 0, kind: input, shape index: {}]   ;;  %s1416_s1 = inlined_call_operand.vmem [shape: f32[256,64], index: 1, kind: input, shape index: {}]   ;;  %s1417_s2 = inlined_call_operand.hbm [shape: f32[16,64], index: 2, kind: output, shape index: {}]  }
   0x1   :  { %v29_v0 = vld [vmem:[%s1416_s1 + $0x78] sm:$0xff]  ;;  %v28_v1 = vld [vmem:[%s1416_s1 + $0x70] sm:$0xff]  ;;  %v27_v2 = vld [vmem:[%s1416_s1 + $0x68] sm:$0xff] }
   0x2   :  { %v813_v3 = vand.u32 4294901760, %v29_v0  ;;  %v815_v4 = vand.u32 4294901760, %v28_v1  ;;  %v817_v5 = vand.u32 4294901760, %v27_v2  ;;  %v26_v6 = vld [vmem:[%s1416_s1 + $0x60] sm:$0xff]  ;;  %v25_v7 = vld [vmem:[%s1416_s1 + $0x58] sm:$0xff]  ;;  %v24_v8 = vld [vmem:[%s1416_s1 + $0x50] sm:$0xff] }
   0x3   :  { %v828_v9 = vand.u32 4294901760, %v26_v6  ;;  %v830_v10 = vand.u32 4294901760, %v25_v7  ;;  %v832_v11 = vand.u32 4294901760, %v24_v8  ;;  %v23_v12 = vld [vmem:[%s1416_s1 + $0x48] sm:$0xff]  ;;  %v22_v13 = vld [vmem:[%s1416_s1 + $0x40] sm:$0xff]  ;;  %v21_v18 = vld [vmem:[%s1416_s1 + $0x38] sm:$0xff] }
   0x4   :  { %47 = vmatpush.msra.mxu0 %v813_v3  ;;  %v842_v14 = vsub.f32 %v29_v0, %v813_v3  ;;  %v845_v15 = vsub.f32 %v28_v1, %v815_v4  ;;  %243 = vmatpush.msra.mxu3 %v813_v3  ;;  %v849_v16 = vsub.f32 %v27_v2, %v817_v5  ;;  %v851_v17 = vand.u32 4294901760, %v23_v12  ;;  %v20_v26 = vld [vmem:[%s1416_s1 + $0x30] sm:$0xff]  ;;  %v19_v34 = vld [vmem:[%s1416_s1 + $0x28] sm:$0xff] }
   0x5   :  { %v857_v19 = vsub.f32 %v26_v6, %v828_v9  ;;  %v860_v20 = vsub.f32 %v25_v7, %v830_v10  ;;  %v863_v21 = vsub.f32 %v24_v8, %v832_v11  ;;  %v870_v25 = vand.u32 4294901760, %v22_v13 }
   0x6   :  { %49 = vmatpush.msra.mxu0 %v815_v4  ;;  %190 = vmatpush.msra.mxu2 %v842_v14  ;;  %v89_v22 = vand.u32 4294901760, %v842_v14  ;;  %v1433_v23 = vand.u32 4294901760, %v845_v15  ;;  %v1431_v24 = vand.u32 4294901760, %v849_v16  ;;  %v877_v28 = vand.u32 4294901760, %v21_v18 }
   0x7   :  { %245 = vmatpush.msra.mxu3 %v815_v4  ;;  %v1429_v27 = vand.u32 4294901760, %v857_v19  ;;  %v880_v29 = vsub.f32 %v23_v12, %v851_v17  ;;  %v1427_v33 = vand.u32 4294901760, %v860_v20 }
   0x8   :  { %51 = vmatpush.msra.mxu0 %v817_v5  ;;  %193 = vmatpush.msra.mxu2 %v845_v15  ;;  %v90_v30 = vsub.f32 %v842_v14, %v89_v22  ;;  %v96_v31 = vsub.f32 %v845_v15, %v1433_v23  ;;  %v102_v32 = vsub.f32 %v849_v16, %v1431_v24 }
   0x9   :  { %7 = vsyncpa [#allocation3], 0  ;;  %247 = vmatpush.msra.mxu3 %v817_v5  ;;  %v898_v35 = vand.u32 4294901760, %v20_v26  ;;  %v1426_v36 = vand.u32 4294901760, %v863_v21  ;;  %v108_v39 = vsub.f32 %v857_v19, %v1429_v27  ;;  %v907_v40 = vsub.f32 %v22_v13, %v870_v25  ;;  %v18_v42 = vld [vmem:[%s1416_s1 + $0x20] sm:$0xff]  ;;  %v17_v48 = vld [vmem:[%s1416_s1 + $0x18] sm:$0xff] }
   0xa   :  { %53 = vmatpush.msra.mxu0 %v828_v9  ;;  %v91_v37 = vand.u32 4294901760, %v90_v30  ;;  %196 = vmatpush.msra.mxu2 %v849_v16  ;;  %v97_v38 = vand.u32 4294901760, %v96_v31  ;;  %v910_v41 = vand.u32 4294901760, %v19_v34  ;;  %v103_v43 = vand.u32 4294901760, %v102_v32  ;;  %v16_v54 = vld [vmem:[%s1416_s1 + $0x10] sm:$0xff]  ;;  %v45_v59 = vld [vmem:[%s1416_s1 + $0xf8] sm:$0xff] }
   0xb   :  { %249 = vmatpush.msra.mxu3 %v828_v9  ;;  %v114_v44 = vsub.f32 %v860_v20, %v1427_v33  ;;  %v1424_v45 = vand.u32 4294901760, %v880_v29  ;;  %v921_v46 = vsub.f32 %v21_v18, %v877_v28  ;;  %v120_v47 = vsub.f32 %v863_v21, %v1426_v36  ;;  %v15_v61 = vld [vmem:[%s1416_s1 + $0x8] sm:$0xff]  ;;  %v14_v2 = vld [vmem:[%s1416_s1] sm:$0xff]  ;;  %v44_v6 = vld [vmem:[%s1416_s1 + $0xf0] sm:$0xff]  ;;  %s743_s23 = sshll.u32 %s1417_s2, 4  ;;  %s787_s24 = smov 128   ;;  %s744_s23 = int_to_ptr.hbm [resolvable:$true] %s743_s23 }
   0xc   :  { %55 = vmatpush.msra.mxu0 %v830_v10  ;;  %92 = vmatpush.msra.mxu1 %v91_v37  ;;  %v109_v49 = vand.u32 4294901760, %v108_v39  ;;  %v932_v50 = vand.u32 4294901760, %v18_v42  ;;  %v1423_v51 = vand.u32 4294901760, %v907_v40  ;;  %v936_v52 = vsub.f32 %v20_v26, %v898_v35  ;;  %v43_v32 = vld [vmem:[%s1416_s1 + $0xe8] sm:$0xff]  ;;  %s788_s25 = smov 8  }
   0xd   :  { %199 = vmatpush.msra.mxu2 %v857_v19  ;;  %251 = vmatpush.msra.mxu3 %v830_v10  ;;  %v941_v53 = vsub.f32 %v19_v34, %v910_v41  ;;  %v115_v55 = vand.u32 4294901760, %v114_v44  ;;  %v126_v56 = vsub.f32 %v880_v29, %v1424_v45  ;;  %v950_v57 = vand.u32 4294901760, %v17_v48  ;;  %v42_v44 = vld [vmem:[%s1416_s1 + $0xe0] sm:$0xff] }
   0xe   :  { %57 = vmatpush.msra.mxu0 %v832_v11  ;;  %98 = vmatpush.msra.mxu1 %v97_v38  ;;  %v1422_v58 = vand.u32 4294901760, %v921_v46  ;;  %v121_v60 = vand.u32 4294901760, %v120_v47  ;;  %v132_v62 = vsub.f32 %v907_v40, %v1423_v51  ;;  %v965_v63 = vand.u32 4294901760, %v16_v54  ;;  %v38_v45 = vld [vmem:[%s1416_s1 + $0xc0] sm:$0xff] }
   0xf   :  { %202 = vmatpush.msra.mxu2 %v860_v20  ;;  %253 = vmatpush.msra.mxu3 %v832_v11  ;;  %v1420_v0 = vand.u32 4294901760, %v936_v52  ;;  %v969_v1 = vsub.f32 %v18_v42, %v932_v50  ;;  %v1419_v7 = vand.u32 4294901760, %v941_v53  ;;  %v980_v8 = vand.u32 4294901760, %v45_v59 }
  0x10   :  { %59 = vmatpush.msra.mxu0 %v851_v17  ;;  %104 = vmatpush.msra.mxu1 %v103_v43  ;;  %v127_v12 = vand.u32 4294901760, %v126_v56  ;;  %v138_v13 = vsub.f32 %v921_v46, %v1422_v58  ;;  %v986_v18 = vand.u32 4294901760, %v15_v61  ;;  %v989_v26 = vsub.f32 %v17_v48, %v950_v57 }
  0x11   :  { %205 = vmatpush.msra.mxu2 %v863_v21  ;;  %255 = vmatpush.msra.mxu3 %v851_v17  ;;  %v993_v30 = vand.u32 4294901760, %v14_v2  ;;  %v995_v31 = vand.u32 4294901760, %v44_v6  ;;  %v133_v34 = vand.u32 4294901760, %v132_v62  ;;  %v144_v37 = vsub.f32 %v936_v52, %v1420_v0 }
  0x12   :  { %61 = vmatpush.msra.mxu0 %v870_v25  ;;  %110 = vmatpush.msra.mxu1 %v109_v49  ;;  %v1418_v38 = vand.u32 4294901760, %v969_v1  ;;  %v1006_v39 = vsub.f32 %v16_v54, %v965_v63  ;;  %v150_v42 = vsub.f32 %v941_v53, %v1419_v7  ;;  %v1014_v43 = vsub.f32 %v45_v59, %v980_v8  ;;  %v41_v59 = vld [vmem:[%s1416_s1 + $0xd8] sm:$0xff]  ;;  %v39_v7 = vld [vmem:[%s1416_s1 + $0xc8] sm:$0xff] }
  0x13   :  { %208 = vmatpush.msra.mxu2 %v880_v29  ;;  %257 = vmatpush.msra.mxu3 %v870_v25  ;;  %v139_v47 = vand.u32 4294901760, %v138_v13  ;;  %v1421_v48 = vand.u32 4294901760, %v989_v26  ;;  %v1022_v49 = vsub.f32 %v15_v61, %v986_v18  ;;  %v1024_v54 = vand.u32 4294901760, %v43_v32  ;;  %v40_v13 = vld [vmem:[%s1416_s1 + $0xd0] sm:$0xff] }
  0x14   :  { %63 = vmatpush.msra.mxu0 %v877_v28  ;;  %116 = vmatpush.msra.mxu1 %v115_v55  ;;  %v1029_v55 = vsub.f32 %v14_v2, %v993_v30  ;;  %v1032_v56 = vsub.f32 %v44_v6, %v995_v31  ;;  %v156_v61 = vsub.f32 %v969_v1, %v1418_v38  ;;  %v1425_v62 = vand.u32 4294901760, %v1006_v39 }
  0x15   :  { %211 = vmatpush.msra.mxu2 %v907_v40  ;;  %259 = vmatpush.msra.mxu3 %v877_v28  ;;  %v151_v2 = vand.u32 4294901760, %v150_v42  ;;  %v1428_v6 = vand.u32 4294901760, %v1014_v43  ;;  %v1056_v38 = vsub.f32 %v43_v32, %v1024_v54  ;;  %v1058_v42 = vand.u32 4294901760, %v41_v59 }
  0x16   :  { %65 = vmatpush.msra.mxu0 %v898_v35  ;;  %122 = vmatpush.msra.mxu1 %v121_v60  ;;  %v145_v60 = vand.u32 4294901760, %v144_v37  ;;  %v1430_v37 = vand.u32 4294901760, %v1022_v49  ;;  %v1432_v0 = vand.u32 4294901760, %v1032_v56  ;;  %v168_v32 = vsub.f32 %v1006_v39, %v1425_v62 }
  0x17   :  { %214 = vmatpush.msra.mxu2 %v921_v46  ;;  %261 = vmatpush.msra.mxu3 %v898_v35  ;;  %v1074_v51 = vand.u32 4294901760, %v40_v13  ;;  %v1435_v36 = vand.u32 4294901760, %v1056_v38  ;;  %v1092_v33 = vsub.f32 %v41_v59, %v1058_v42  ;;  %v1099_v27 = vand.u32 4294901760, %v38_v45 }
  0x18   :  { %67 = vmatpush.msra.mxu0 %v910_v41  ;;  %128 = vmatpush.msra.mxu1 %v127_v12  ;;  %v1042_v12 = vand.u32 4294901760, %v42_v44  ;;  %v174_v62 = vsub.f32 %v1022_v49, %v1430_v37  ;;  %vm730_vm0 = vcmask 517120   ;;  %vm728_vm1 = vcmask 519168  }
  0x19   :  { %217 = vmatpush.msra.mxu2 %v936_v52  ;;  %263 = vmatpush.msra.mxu3 %v910_v41  ;;  %v1110_v24 = vsub.f32 %v40_v13, %v1074_v51  ;;  %v443_v13 = vsub.f32 %v1056_v38, %v1435_v36  ;;  %v1437_v14 = vand.u32 4294901760, %v1092_v33  ;;  %vm733_vm2 = vcmask 523268  }
  0x1a   :  { %69 = vmatpush.msra.mxu0 %v932_v50  ;;  %134 = vmatpush.msra.mxu1 %v133_v34  ;;  %v162_v34 = vsub.f32 %v989_v26, %v1421_v48  ;;  %v157_v48 = vand.u32 4294901760, %v156_v61  ;;  %v1072_v58 = vsub.f32 %v42_v44, %v1042_v12  ;;  %v1084_v61 = vand.u32 4294901760, %v39_v7 }
  0x1b   :  { %220 = vmatpush.msra.mxu2 %v941_v53  ;;  %265 = vmatpush.msra.mxu3 %v932_v50 }
  0x1c   :  { %71 = vmatpush.msra.mxu0 %v950_v57  ;;  %140 = vmatpush.msra.mxu1 %v139_v47  ;;  %v1434_v47 = vand.u32 4294901760, %v1029_v55  ;;  %v163_v44 = vand.u32 4294901760, %v162_v34  ;;  %v169_v34 = vand.u32 4294901760, %v168_v32  ;;  %v1436_v37 = vand.u32 4294901760, %v1072_v58 }
  0x1d   :  { %223 = vmatpush.msra.mxu2 %v969_v1  ;;  %267 = vmatpush.msra.mxu3 %v950_v57  ;;  %v1116_v23 = vsub.f32 %v39_v7, %v1084_v61  ;;  %v175_v32 = vand.u32 4294901760, %v174_v62  ;;  %v35_v62 = vld [vmem:[%s1416_s1 + $0xa8] sm:$0xff] }
  0x1e   :  { %73 = vmatpush.msra.mxu0 %v965_v63  ;;  %146 = vmatpush.msra.mxu1 %v145_v60  ;;  %v431_v60 = vsub.f32 %v1014_v43, %v1428_v6  ;;  %v437_v6 = vsub.f32 %v1032_v56, %v1432_v0  ;;  %v180_v59 = vsub.f32 %v1029_v55, %v1434_v47 }
  0x1f   :  { %226 = vmatpush.msra.mxu2 %v989_v26  ;;  %269 = vmatpush.msra.mxu3 %v965_v63  ;;  %v1132_v47 = vsub.f32 %v38_v45, %v1099_v27  ;;  %v449_v36 = vsub.f32 %v1072_v58, %v1436_v37  ;;  %v455_v37 = vsub.f32 %v1092_v33, %v1437_v14  ;;  %v1441_v14 = vand.u32 4294901760, %v1110_v24 }
  0x20   :  { %75 = vmatpush.msra.mxu0 %v986_v18  ;;  %152 = vmatpush.msra.mxu1 %v151_v2  ;;  %v37_v2 = vld [vmem:[%s1416_s1 + $0xb8] sm:$0xff]  ;;  %v432_v0 = vand.u32 4294901760, %v431_v60  ;;  %v1438_v60 = vand.u32 4294901760, %v845_v15  ;;  %v438_v7 = vand.u32 4294901760, %v437_v6  ;;  %v1439_v6 = vand.u32 4294901760, %v849_v16 }
  0x21   :  { %229 = vmatpush.msra.mxu2 %v1006_v39  ;;  %271 = vmatpush.msra.mxu3 %v986_v18  ;;  %v1157_v16 = vand.u32 4294901760, %v35_v62 }
  0x22   :  { %77 = vmatpush.msra.mxu0 %v993_v30  ;;  %158 = vmatpush.msra.mxu1 %v157_v48  ;;  %v36_v48 = vld [vmem:[%s1416_s1 + $0xb0] sm:$0xff] }
  0x23   :  { %232 = vmatpush.msra.mxu2 %v1022_v49  ;;  %273 = vmatpush.msra.mxu3 %v993_v30 }
  0x24   :  { %284 = vmatpush.msrb.mxu0 %v89_v22  ;;  %164 = vmatpush.msra.mxu1 %v163_v44  ;;  %v1126_v22 = vand.u32 4294901760, %v37_v2  ;;  %v181_v44 = vand.u32 4294901760, %v180_v59  ;;  %v444_v59 = vand.u32 4294901760, %v443_v13  ;;  %v450_v13 = vand.u32 4294901760, %v449_v36  ;;  %v12_v36 = vld [vmem:[%s1415_s0] sm:$0xff] }
  0x25   :  { %235 = vmatpush.msra.mxu2 %v1029_v55  ;;  %433 = vmatpush.msrb.mxu3 %v432_v0  ;;  %v1440_v0 = vand.u32 4294901760, %v857_v19 }
  0x26   :  { %288 = vmatpush.msrb.mxu0 %v1438_v60  ;;  %170 = vmatpush.msra.mxu1 %v169_v34  ;;  %v1142_v60 = vand.u32 4294901760, %v36_v48  ;;  %v34_v34 = vld [vmem:[%s1416_s1 + $0xa0] sm:$0xff]  ;;  %v1155_v15 = vsub.f32 %v37_v2, %v1126_v22  ;;  %v461_v2 = vsub.f32 %v1110_v24, %v1441_v14 }
  0x27   :  { %388 = vmatpush.msrb.mxu2 %v980_v8  ;;  %439 = vmatpush.msrb.mxu3 %v438_v7  ;;  %v1172_v19 = vand.u32 4294901760, %v34_v34  ;;  %v1442_v7 = vand.u32 4294901760, %v860_v20 }
  0x28   :  { %292 = vmatpush.msrb.mxu0 %v1439_v6  ;;  %176 = vmatpush.msra.mxu1 %v175_v32  ;;  %v33_v32 = vld [vmem:[%s1416_s1 + $0x98] sm:$0xff]  ;;  %v1170_v45 = vsub.f32 %v36_v48, %v1142_v60  ;;  %v456_v48 = vand.u32 4294901760, %v455_v37  ;;  %v1186_v6 = vsub.f32 %v35_v62, %v1157_v16  ;;  %v32_v37 = vld [vmem:[%s1416_s1 + $0x90] sm:$0xff]  ;;  %v462_v62 = vand.u32 4294901760, %v461_v2 }
  0x29   :  { %390 = vmatpush.msrb.mxu2 %v995_v31  ;;  %445 = vmatpush.msrb.mxu3 %v444_v59  ;;  %v1188_v20 = vand.u32 4294901760, %v33_v32  ;;  %v1202_v14 = vsub.f32 %v34_v34, %v1172_v19  ;;  %v1217_v59 = vand.u32 4294901760, %v32_v37 }
  0x2a   :  { %296 = vmatpush.msrb.mxu0 %v1440_v0  ;;  %182 = vmatpush.msra.mxu1 %v181_v44  ;;  %v1443_v0 = vand.u32 4294901760, %v1116_v23 }
  0x2b   :  { %392 = vmatpush.msrb.mxu2 %v1024_v54  ;;  %451 = vmatpush.msrb.mxu3 %v450_v13  ;;  %v1447_v13 = vand.u32 4294901760, %v1155_v15 }
  0x2c   :  { %300 = vmatpush.msrb.mxu0 %v1442_v7  ;;  %351 = vmatpush.msrb.mxu1 %v813_v3  ;;  %v467_v44 = vsub.f32 %v1116_v23, %v1443_v0  ;;  %v1444_v3 = vand.u32 4294901760, %v863_v21  ;;  %v1445_v7 = vand.u32 4294901760, %v1132_v47  ;;  %v1204_v21 = vand.u32 4294901760, %v12_v36 }
  0x2d   :  { %394 = vmatpush.msrb.mxu2 %v1042_v12  ;;  %457 = vmatpush.msrb.mxu3 %v456_v48  ;;  %v479_v34 = vsub.f32 %v1155_v15, %v1447_v13  ;;  %v1449_v48 = vand.u32 4294901760, %v1170_v45  ;;  %v1452_v13 = vand.u32 4294901760, %v936_v52  ;;  %v1454_v52 = vand.u32 4294901760, %v941_v53 }
  0x2e   :  { %304 = vmatpush.msrb.mxu0 %v1444_v3  ;;  %353 = vmatpush.msrb.mxu1 %v815_v4  ;;  %v473_v0 = vsub.f32 %v1132_v47, %v1445_v7  ;;  %v1446_v4 = vand.u32 4294901760, %v880_v29  ;;  %v468_v3 = vand.u32 4294901760, %v467_v44  ;;  %v31_v7 = vld [vmem:[%s1416_s1 + $0x88] sm:$0xff]  ;;  %v1220_v29 = vsub.f32 %v33_v32, %v1188_v20 }
  0x2f   :  { %396 = vmatpush.msrb.mxu2 %v1058_v42  ;;  %463 = vmatpush.msrb.mxu3 %v462_v62  ;;  %v1231_v2 = vsub.f32 %v12_v36, %v1204_v21  ;;  %v1233_v32 = vand.u32 4294901760, %v31_v7  ;;  %v1451_v62 = vand.u32 4294901760, %v1186_v6 }
  0x30   :  { %308 = vmatpush.msrb.mxu0 %v1446_v4  ;;  %355 = vmatpush.msrb.mxu1 %v817_v5  ;;  %v1448_v5 = vand.u32 4294901760, %v907_v40  ;;  %v474_v44 = vand.u32 4294901760, %v473_v0  ;;  %v485_v4 = vsub.f32 %v1170_v45, %v1449_v48  ;;  %v30_v40 = vld [vmem:[%s1416_s1 + $0x80] sm:$0xff]  ;;  %v480_v0 = vand.u32 4294901760, %v479_v34 }
  0x31   :  { %398 = vmatpush.msrb.mxu2 %v1074_v51  ;;  %469 = vmatpush.msrb.mxu3 %v468_v3  ;;  %v491_v36 = vsub.f32 %v1186_v6, %v1451_v62  ;;  %v1247_v48 = vsub.f32 %v32_v37, %v1217_v59  ;;  %v1453_v3 = vand.u32 4294901760, %v1202_v14  ;;  %v1260_v37 = vsub.f32 %v31_v7, %v1233_v32 }
  0x32   :  { %312 = vmatpush.msrb.mxu0 %v1448_v5  ;;  %357 = vmatpush.msrb.mxu1 %v828_v9  ;;  %v1450_v9 = vand.u32 4294901760, %v921_v46  ;;  %v502_v5 = vand.u32 4294901760, %v1220_v29  ;;  %v1252_v46 = vand.u32 4294901760, %v30_v40 }
  0x33   :  { %400 = vmatpush.msrb.mxu2 %v1084_v61  ;;  %475 = vmatpush.msrb.mxu3 %v474_v44  ;;  %v497_v34 = vsub.f32 %v1202_v14, %v1453_v3  ;;  %v492_v44 = vand.u32 4294901760, %v491_v36  ;;  %v508_v7 = vand.u32 4294901760, %v1247_v48  ;;  %v514_v62 = vand.u32 4294901760, %v1260_v37 }
  0x34   :  { %316 = vmatpush.msrb.mxu0 %v1450_v9  ;;  %359 = vmatpush.msrb.mxu1 %v830_v10  ;;  %v486_v10 = vand.u32 4294901760, %v485_v4  ;;  %v80_v9 = vand.u32 4294901760, %v1231_v2  ;;  %v503_v4 = vsub.f32 %v1220_v29, %v502_v5  ;;  %v1456_v3 = vand.u32 4294901760, %v989_v26 }
  0x35   :  { %402 = vmatpush.msrb.mxu2 %v1099_v27  ;;  %481 = vmatpush.msrb.mxu3 %v480_v0  ;;  %v498_v53 = vand.u32 4294901760, %v497_v34 }
  0x36   :  { %320 = vmatpush.msrb.mxu0 %v1452_v13  ;;  %361 = vmatpush.msrb.mxu1 %v832_v11  ;;  %v13_v11 = vld [vmem:[%s1415_s0 + $0x8] sm:$0xff]  ;;  %v1455_v13 = vand.u32 4294901760, %v969_v1  ;;  %v81_v0 = vsub.f32 %v1231_v2, %v80_v9  ;;  %v509_v1 = vsub.f32 %v1247_v48, %v508_v7  ;;  %s786_s0 = smov [#allocation2]  }
  0x37   :  { %404 = vmatpush.msrb.mxu2 %v1126_v22  ;;  %487 = vmatpush.msrb.mxu3 %v486_v10  ;;  %v1282_v36 = vand.u32 4294901760, %v13_v11  ;;  %s741_s20 = sshll.u32 %s786_s0, 4  ;;  %s742_s20 = int_to_ptr.vmem [resolvable:$true] %s741_s20 }
  0x38   :  { %324 = vmatpush.msrb.mxu0 %v1454_v52  ;;  %363 = vmatpush.msrb.mxu1 %v851_v17  ;;  %v1277_v17 = vsub.f32 %v30_v40, %v1252_v46  ;;  %v1457_v40 = vand.u32 4294901760, %v1006_v39  ;;  %v82_v26 = vand.u32 4294901760, %v81_v0  ;;  %v1458_v52 = vand.u32 4294901760, %v1022_v49 }
  0x39   :  { %406 = vmatpush.msrb.mxu2 %v1142_v60  ;;  %493 = vmatpush.msrb.mxu3 %v492_v44  ;;  %v1300_v34 = vsub.f32 %v13_v11, %v1282_v36  ;;  %v1459_v39 = vand.u32 4294901760, %v1029_v55 }
  0x3a   :  { %328 = vmatpush.msrb.mxu0 %v1455_v13  ;;  %365 = vmatpush.msrb.mxu1 %v870_v25  ;;  %v504_v25 = vand.u32 4294901760, %v503_v4  ;;  %v520_v10 = vand.u32 4294901760, %v1277_v17 }
  0x3b   :  { %408 = vmatpush.msrb.mxu2 %v1157_v16  ;;  %499 = vmatpush.msrb.mxu3 %v498_v53  ;;  %v421_v11 = vand.u32 4294901760, %v1300_v34 }
  0x3c   :  { %332 = vmatpush.msrb.mxu0 %v1456_v3  ;;  %367 = vmatpush.msrb.mxu1 %v877_v28  ;;  %v515_v28 = vsub.f32 %v1260_v37, %v514_v62  ;;  %v521_v44 = vsub.f32 %v1277_v17, %v520_v10 }
  0x3d   :  { %410 = vmatpush.msrb.mxu2 %v1172_v19  ;;  %505 = vmatpush.msrb.mxu3 %v504_v25 }
  0x3e   :  { %336 = vmatpush.msrb.mxu0 %v1457_v40  ;;  %369 = vmatpush.msrb.mxu1 %v898_v35  ;;  %v510_v35 = vand.u32 4294901760, %v509_v1  ;;  %v516_v49 = vand.u32 4294901760, %v515_v28 }
  0x3f   :  { %412 = vmatpush.msrb.mxu2 %v1188_v20  ;;  %83 = vmatmul.f32.vlgmr.msra.gmra.mxu0 %v82_v26 }
  0x40   :  { %340 = vmatpush.msrb.mxu0 %v1458_v52  ;;  %371 = vmatpush.msrb.mxu1 %v910_v41  ;;  %v522_v41 = vand.u32 4294901760, %v521_v44 }
  0x41   :  { %414 = vmatpush.msrb.mxu2 %v1217_v59  ;;  %511 = vmatpush.msrb.mxu3 %v510_v35 }
  0x42   :  { %344 = vmatpush.msrb.mxu0 %v1459_v39  ;;  %373 = vmatpush.msrb.mxu1 %v932_v50  ;;  %v422_v50 = vsub.f32 %v1300_v34, %v421_v11 }
  0x43   :  { %416 = vmatpush.msrb.mxu2 %v1233_v32  ;;  %517 = vmatpush.msrb.mxu3 %v516_v49 }
  0x44   :  { %531 = vmatpush.msra.mxu0 %v1014_v43  ;;  %375 = vmatpush.msrb.mxu1 %v950_v57  ;;  %v1460_v57 = vand.u32 4294901760, %v1014_v43  ;;  %v423_v55 = vand.u32 4294901760, %v422_v50  ;;  %v1462_v43 = vand.u32 4294901760, %v1056_v38 }
  0x45   :  { %238 = vmatmul.f32.vlgmr.msra.gmra.mxu2 %v1231_v2  ;;  %277 = vmatmul.f32.vlgmr.msra.gmra.mxu3 %v80_v9 }
  0x46   :  { %534 = vmatpush.msra.mxu0 %v1032_v56  ;;  %377 = vmatpush.msrb.mxu1 %v965_v63  ;;  %v1461_v63 = vand.u32 4294901760, %v1032_v56 }
  0x47   :  { %418 = vmatpush.msrb.mxu2 %v1252_v46  ;;  %523 = vmatpush.msrb.mxu3 %v522_v41 }
  0x48   :  { %537 = vmatpush.msra.mxu0 %v1056_v38  ;;  %379 = vmatpush.msrb.mxu1 %v986_v18  ;;  %v1463_v18 = vand.u32 4294901760, %v1072_v58 }
  0x49   :  { %625 = vmatpush.msra.mxu2 %v1460_v57  ;;  %184 = vmatmul.f32.vlgmr.msra.gmra.mxu1 %v1204_v21 }
  0x4a   :  { %540 = vmatpush.msra.mxu0 %v1072_v58  ;;  %692 = vmatpush.msra.mxu3 %v980_v8  ;;  %v1465_v58 = vand.u32 4294901760, %v1110_v24 }
  0x4b   :  { %629 = vmatpush.msra.mxu2 %v1461_v63  ;;  %381 = vmatpush.msrb.mxu1 %v993_v30  ;;  %v1467_v30 = vand.u32 4294901760, %v1132_v47 }
  0x4c   :  { %543 = vmatpush.msra.mxu0 %v1092_v33  ;;  %694 = vmatpush.msra.mxu3 %v995_v31 }
  0x4d   :  { %584 = vmatpush.msra.mxu1 %v980_v8  ;;  %633 = vmatpush.msra.mxu2 %v1462_v43  ;;  %v1464_v8 = vand.u32 4294901760, %v1092_v33  ;;  %v1466_v33 = vand.u32 4294901760, %v1116_v23 }
  0x4e   :  { %424 = vmatmul.f32.vlgmr.msrb.gmra.mxu2 %v423_v55  ;;  %546 = vmatpush.msra.mxu0 %v1110_v24  ;;  %v1468_v24 = vand.u32 4294901760, %v1155_v15 }
  0x4f   :  { %586 = vmatpush.msra.mxu1 %v995_v31  ;;  %637 = vmatpush.msra.mxu2 %v1463_v18 }
  0x50   :  { %696 = vmatpush.msra.mxu3 %v1024_v54  ;;  %346 = vmatmul.f32.vlgmr.msrb.gmra.mxu0 %v1204_v21 }
  0x51   :  { %525 = vmatmul.f32.vlgmr.msrb.gmra.mxu3 %v1282_v36  ;;  %549 = vmatpush.msra.mxu0 %v1116_v23  ;;  %v1469_v23 = vand.u32 4294901760, %v1170_v45 }
  0x52   :  { %588 = vmatpush.msra.mxu1 %v1024_v54  ;;  %641 = vmatpush.msra.mxu2 %v1464_v8 }
  0x53   :  { %698 = vmatpush.msra.mxu3 %v1042_v12  ;;  %383 = vmatmul.f32.vlgmr.msrb.gmra.mxu1 %v1204_v21 }
  0x54   :  { %552 = vmatpush.msra.mxu0 %v1132_v47  ;;  %590 = vmatpush.msra.mxu1 %v1042_v12 }
  0x55   :  { %645 = vmatpush.msra.mxu2 %v1465_v58  ;;  %700 = vmatpush.msra.mxu3 %v1058_v42 }
  0x56   :  { %555 = vmatpush.msra.mxu0 %v1155_v15  ;;  %592 = vmatpush.msra.mxu1 %v1058_v42  ;;  %v785_v42 = vmov 0.0  }
  0x57   :  { %649 = vmatpush.msra.mxu2 %v1466_v33  ;;  %702 = vmatpush.msra.mxu3 %v1074_v51  ;;  %731 = vst.msk [vmem:[#allocation2] sm:$0x3] %vm730_vm0, %v785_v42 }
  0x58   :  { %558 = vmatpush.msra.mxu0 %v1170_v45  ;;  %594 = vmatpush.msra.mxu1 %v1074_v51  ;;  %v1470_v51 = vand.u32 4294901760, %v1186_v6  ;;  %732 = vst.msk [vmem:[#allocation2 + $0x6] sm:$0x3] %vm730_vm0, %v785_v42 }
  0x59   :  { %653 = vmatpush.msra.mxu2 %v1467_v30  ;;  %704 = vmatpush.msra.mxu3 %v1084_v61  ;;  %735 = vst.msk [vmem:[#allocation2 + $0x8] sm:$0x3] %vm730_vm0, %v785_v42 }
  0x5a   :  { %561 = vmatpush.msra.mxu0 %v1186_v6  ;;  %596 = vmatpush.msra.mxu1 %v1084_v61  ;;  %736 = vst.msk [vmem:[#allocation2 + $0xe] sm:$0x3] %vm730_vm0, %v785_v42 }
  0x5b   :  { %657 = vmatpush.msra.mxu2 %v1468_v24  ;;  %706 = vmatpush.msra.mxu3 %v1099_v27 }
  0x5c   :  { %564 = vmatpush.msra.mxu0 %v1202_v14  ;;  %598 = vmatpush.msra.mxu1 %v1099_v27  ;;  %v1471_v27 = vand.u32 4294901760, %v1202_v14 }
  0x5d   :  { %661 = vmatpush.msra.mxu2 %v1469_v23  ;;  %708 = vmatpush.msra.mxu3 %v1126_v22 }
  0x5e   :  { %567 = vmatpush.msra.mxu0 %v1220_v29  ;;  %600 = vmatpush.msra.mxu1 %v1126_v22 }
  0x5f   :  { %665 = vmatpush.msra.mxu2 %v1470_v51  ;;  %710 = vmatpush.msra.mxu3 %v1142_v60 }
  0x60   :  { %570 = vmatpush.msra.mxu0 %v1247_v48  ;;  %602 = vmatpush.msra.mxu1 %v1142_v60 }
  0x61   :  { %669 = vmatpush.msra.mxu2 %v1471_v27  ;;  %712 = vmatpush.msra.mxu3 %v1157_v16 }
  0x62   :  { %573 = vmatpush.msra.mxu0 %v1260_v37  ;;  %604 = vmatpush.msra.mxu1 %v1157_v16 }
  0x63   :  { %673 = vmatpush.msra.mxu2 %v502_v5  ;;  %714 = vmatpush.msra.mxu3 %v1172_v19 }
  0x64   :  { %576 = vmatpush.msra.mxu0 %v1277_v17  ;;  %606 = vmatpush.msra.mxu1 %v1172_v19 }
  0x65   :  { %677 = vmatpush.msra.mxu2 %v508_v7  ;;  %716 = vmatpush.msra.mxu3 %v1188_v20 }
  0x66   :  { %579 = vmatmul.f32.vlgmr.msra.gmra.mxu0 %v1300_v34  ;;  %608 = vmatpush.msra.mxu1 %v1188_v20 }
  0x67   :  { %681 = vmatpush.msra.mxu2 %v514_v62  ;;  %718 = vmatpush.msra.mxu3 %v1217_v59 }
  0x68   :  { %610 = vmatpush.msra.mxu1 %v1217_v59 }
  0x69   :  { %685 = vmatpush.msra.mxu2 %v520_v10  ;;  %720 = vmatpush.msra.mxu3 %v1233_v32 }
  0x6a   :  { %687 = vmatmul.f32.vlgmr.msra.gmra.mxu2 %v1282_v36  ;;  %612 = vmatpush.msra.mxu1 %v1233_v32 }
  0x6b   :  { %722 = vmatpush.msra.mxu3 %v1252_v46 }
  0x6c   :  { %724 = vmatmul.f32.vlgmr.msra.gmra.mxu3 %v1282_v36  ;;  %614 = vmatpush.msra.mxu1 %v1252_v46 }
  0x6d   :  { %618 = vmatmul.f32.vlgmr.msra.gmra.mxu1 %v421_v11 }
  0xbc   :  { %v84_v38 = vpop.f32.mrf.mxu0 }
  0xc6   :  { %v185_v31 = vpop.f32.mrf.mxu1 }
  0xc7   :  { %v186_v54 = vadd.f32 %v185_v31, %v84_v38 }
  0xc8   :  { %v239_v56 = vpop.f32.mrf.mxu2  ;;  %v278_v47 = vpop.f32.mrf.mxu3 }
  0xc9   :  { %v240_v12 = vadd.f32 %v239_v56, %v186_v54 }
  0xcb   :  { %v279_v61 = vadd.f32 %v278_v47, %v240_v12 }
  0xcd   :  { %v347_v22 = vpop.f32.mrf.mxu0 }
  0xce   :  { %v348_v15 = vadd.f32 %v347_v22, %v279_v61 }
  0xd0   :  { %v384_v60 = vpop.f32.mrf.mxu1 }
  0xd1   :  { %v385_v45 = vadd.f32 %v384_v60, %v348_v15  ;;  %v425_v16 = vpop.f32.mrf.mxu2 }
  0xd3   :  { %v426_v6 = vadd.f32 %v425_v16, %v385_v45 }
  0xd4   :  { %v526_v19 = vpop.f32.mrf.mxu3 }
  0xd5   :  { %v527_v20 = vadd.f32 %v526_v19, %v426_v6 }
  0xe3   :  { %v580_v14 = vpop.f32.mrf.mxu0 }
  0xe4   :  { %v581_v59 = vadd.f32 %v580_v14, %v527_v20 }
  0xea   :  { %v619_v21 = vpop.f32.mrf.mxu1 }
  0xeb   :  { %v620_v2 = vadd.f32 %v619_v21, %v581_v59 }
  0xed   :  { %v688_v29 = vpop.f32.mrf.mxu2 }
  0xee   :  { %v689_v32 = vadd.f32 %v688_v29, %v620_v2 }
  0xef   :  { %v725_v5 = vpop.f32.mrf.mxu3 }
  0xf0   :  { %v726_v48 = vadd.f32 %v725_v5, %v689_v32 }
  0xf2   :  { %729 = vst.msk [vmem:[#allocation2 + $0x2] sm:$0xf] %vm728_vm1, %v726_v48 }
  0xf3   :  { %734 = vst.msk [vmem:[#allocation2 + $0x6] sm:$0xf0] %vm733_vm2, %v726_v48 }
  0xf4   :  { %749 = dma.vmem_to_hbm [thread:$0]  %s742_s20, 256, %s744_s23, [#allocation3], %s787_s24, %s787_s24, %s788_s25  }
  0xf5   :  { %783 = dma.done.wait [#allocation3], 256  }
  0xf6   :  { %784 = vsyncadd [#allocation3], 4294967040 }
  0xf7   :  { %754 = vsyncpa [#allocation3], 1 }

</bundles_post_ra>
